<compile_context>
chip_gen: v7x
topology: tpu7x:2x2x1
jax: 0.10.0
libtpu: 0.0.40
codegen_flags: <defaults>
</compile_context>

<pallas_src>
import math

import jax
import jax.numpy as jnp
from jax import lax
from jax.experimental import pallas as pl
from jax.experimental.pallas import tpu as pltpu


# ----------------------------------------------------------------------------------
# Hardware-aware sizing helpers
# ----------------------------------------------------------------------------------
def _vmem_capacity_bytes():
    """Physical VMEM of the local TPU generation; conservative v7x-sized fallback."""
    try:
        info = pltpu.get_tpu_info()
        cap = getattr(info, "vmem_capacity_bytes", None)
        if cap:
            return int(cap)
    except Exception:
        pass
    return 64 * 1024 * 1024


def _pick_block_rows(H, W, N, per_row_bytes, target_pixels, vmem_budget, max_rows):
    """Rows of the input map processed per grid step.

    Constraints:
      * (th * W) % 8 == 0  or  th == H   (input block's second-minor dim),
      * fit the VMEM budget and the ~target_pixels block target,
      * leave >= ~4 total grid steps when N is small (v7x 2-TC sharding + pipelining),
      * prefer a divisor of H (no tiny ragged last block).
    """
    u = 8 // math.gcd(W, 8)                        # th multiple of u keeps th*W % 8 == 0
    cap = max(1, target_pixels // max(W, 1))
    cap = min(cap, max(1, vmem_budget // max(per_row_bytes, 1)))
    min_steps = -(-4 // max(N, 1))                 # ceil(4 / N)
    cap = min(cap, max(1, -(-H // min_steps)))     # ceil(H / min_steps)
    cap = min(cap, max_rows, H)
    if cap >= H:
        return H                                   # whole image: minor dim == full -> legal
    if cap < u:
        return min(u, H)
    cap = (cap // u) * u
    t = cap
    while t >= max(u, cap // 2):                   # look for a divisor of H within 2x
        if H % t == 0:
            return t
        t -= u
    return cap


# ----------------------------------------------------------------------------------
# The fused ConvTranspose2d(k=2, s=2) + pixel-shuffle kernel
# ----------------------------------------------------------------------------------
def _make_up2x_kernel(cin, cout, w_cols, th, row_sliced, precision):
    """One block of `th` input rows.

    Refs:
      x_ref: (1, th*W, Cin)          pixels (NHWC order) x channels
      w_ref: (Cin, 4*Cout)           columns ordered (kh, kw, co)
      b_ref: (1, 4*Cout)             bias tiled over (kh, kw)
      o_ref: (1, th, 2, W, 2*Cout)   [h][kh][w][(kw, co)] == upsampled NHWC after reshape
    """
    two_c = 2 * cout

    def kernel(x_ref, w_ref, b_ref, o_ref):
        x = x_ref[0]                                           # (th*W, Cin)

        if cin >= 8:
            # Single fused MXU GEMM: N = 4*Cout fills the wide MXU on v6e/v7x.
            r = jnp.dot(x, w_ref[...],
                        preferred_element_type=jnp.float32,
                        precision=precision)                   # (th*W, 4*Cout) f32
        else:
            # Tiny Cin only: VPU broadcast-FMA, exact in f32.
            xf = x.astype(jnp.float32)
            wf = w_ref[...].astype(jnp.float32)
            r = xf[:, 0:1] * wf[0:1, :]
            for ci in range(1, cin):
                r = r + xf[:, ci:ci + 1] * wf[ci:ci + 1, :]

        r = (r + b_ref[...].astype(jnp.float32)).astype(o_ref.dtype)

        if not row_sliced:
            # W % 8 == 0: (th*W, 2C) -> (th, W, 2C) splits the sublane dim only (cheap).
            o_ref[0, :, 0, :, :] = r[:, :two_c].reshape(th, w_cols, two_c)
            o_ref[0, :, 1, :, :] = r[:, two_c:].reshape(th, w_cols, two_c)
        else:
            # W % 8 != 0: row-by-row static sublane slices, no reshape needed.
            for h in range(th):
                row = r[h * w_cols:(h + 1) * w_cols, :]
                o_ref[0, h, 0, :, :] = row[:, :two_c]
                o_ref[0, h, 1, :, :] = row[:, two_c:]

    return kernel


def conv_transpose2x2_s2_nhwc(x_nhwc, weight, bias, *,
                              target_block_pixels=None, precision=None):
    """ConvTranspose2d(Cin, Cout, kernel_size=2, stride=2): NHWC in -> NHWC out.

    Single fused Pallas kernel; the output is written directly in a
    (N, H, kh, W, (kw, co)) layout that is the final 2x-upsampled NHWC map after a
    metadata-only reshape -- no post-kernel shuffle / extra HBM pass.
    """
    N, H, W, Cin = x_nhwc.shape
    Cout = weight.shape[1]
    dt = x_nhwc.dtype
    isz = jnp.dtype(dt).itemsize
    two_c, four_c = 2 * Cout, 4 * Cout

    # weight (Cin, Cout, kh, kw) -> (Cin, (kh, kw, co)); bias tiled over (kh, kw).
    w_r = jnp.transpose(weight, (0, 2, 3, 1)).reshape(Cin, four_c)
    b_r = jnp.tile(bias, 4).reshape(1, four_c)

    vmem_cap = _vmem_capacity_bytes()
    if target_block_pixels is None:
        # Bigger blocks on 128 MiB parts (v5e/v6e); 64 MiB v7x stays at 2048.
        target_block_pixels = 4096 if vmem_cap >= 96 * 1024 * 1024 else 2048

    row_sliced = (W % 8 != 0)
    max_rows = 32 if row_sliced else H            # bound the unrolled store loop
    # double-buffered in + out blocks + f32 intermediates, per input row
    per_row = W * (2 * Cin * isz + 8 * Cout * isz + 32 * Cout)
    th = _pick_block_rows(H, W, N, per_row, target_block_pixels,
                          int(0.30 * vmem_cap), max_rows)
    n_h = pl.cdiv(H, th)
    tp = th * W

    need = per_row * th + 2 * (Cin * four_c + four_c) * isz
    floor = 64 * 1024 * 1024 if vmem_cap >= 96 * 1024 * 1024 else 32 * 1024 * 1024
    vmem_limit = int(min(0.8 * vmem_cap, max(floor, 2.5 * need)))

    x3 = x_nhwc.reshape(N, H * W, Cin)
    kernel = _make_up2x_kernel(Cin, Cout, W, th, row_sliced, precision)

    y = pl.pallas_call(
        kernel,
        out_shape=jax.ShapeDtypeStruct((N, H, 2, W, two_c), dt),
        grid_spec=pltpu.PrefetchScalarGridSpec(
            num_scalar_prefetch=0,
            grid=(N, n_h),
            in_specs=[
                pl.BlockSpec((1, tp, Cin), lambda n, i: (n, i, 0)),
                pl.BlockSpec((Cin, four_c), lambda n, i: (0, 0)),
                pl.BlockSpec((1, four_c), lambda n, i: (0, 0)),
            ],
            out_specs=pl.BlockSpec((1, th, 2, W, two_c),
                                   lambda n, i: (n, i, 0, 0, 0)),
        ),
        compiler_params=pltpu.CompilerParams(
            dimension_semantics=("parallel", "parallel"),
            vmem_limit_bytes=vmem_limit,
        ),
        cost_estimate=pl.CostEstimate(
            flops=2 * N * H * W * Cin * four_c,
            transcendentals=0,
            bytes_accessed=(N * H * W * Cin + Cin * four_c + four_c
                            + N * H * W * four_c) * isz,
        ),
    )(x3, w_r, b_r)

    # (N, H, kh, W, (kw, co)) is exactly the 2x-upsampled NHWC map after a pure
    # (metadata-only) reshape: (h, kh) -> 2h+kh, (w, kw) -> 2w+kw.
    return y.reshape(N, 2 * H, 2 * W, Cout)


# ----------------------------------------------------------------------------------
# Up2d forward: pad quirk + public entry points
# ----------------------------------------------------------------------------------
def _pad_w_like_torch(y_nhwc, target_h, target_w):
    # F.pad with a 2-tuple pads only the last (W) dim of the NCHW tensor; the original
    # module uses diff_h for the left pad (quirk kept).  Negative pads crop, like torch.
    diff_h = y_nhwc.shape[1] - target_h
    diff_w = y_nhwc.shape[2] - target_w
    pad_left = diff_h - diff_h // 2
    pad_right = diff_w - diff_w // 2
    if pad_left == 0 and pad_right == 0:
        return y_nhwc
    return lax.pad(y_nhwc, jnp.asarray(0, y_nhwc.dtype),
                   [(0, 0, 0), (0, 0, 0), (pad_left, pad_right, 0), (0, 0, 0)])


def up2d_forward_nhwc(x_nhwc, t_nhwc, weight, bias, *,
                      target_block_pixels=None, precision=None):
    """Up2d.forward with NHWC activations: the recommended, transpose-free path."""
    y = conv_transpose2x2_s2_nhwc(x_nhwc, weight, bias,
                                  target_block_pixels=target_block_pixels,
                                  precision=precision)
    return _pad_w_like_torch(y, t_nhwc.shape[1], t_nhwc.shape[2])


def up2d_forward(x, t_feat, weight, bias, *,
                 target_block_pixels=None, precision=None):
    """Drop-in NCHW version of Up2d.forward (bilinear=False), PyTorch convention.

    NOTE: the NCHW interface costs one NHWC<->NCHW transpose on each side of the kernel
    (the output one runs over the 4x-upsampled tensor).  For an HBM-optimal pipeline keep
    the surrounding BiFPN in NHWC end-to-end and call `up2d_forward_nhwc` instead.
    """
    x_nhwc = jnp.transpose(x, (0, 2, 3, 1))          # small, pre-upsample tensor
    y = conv_transpose2x2_s2_nhwc(x_nhwc, weight, bias,
                                  target_block_pixels=target_block_pixels,
                                  precision=precision)
    y = _pad_w_like_torch(y, t_feat.shape[2], t_feat.shape[3])
    return jnp.transpose(y, (0, 3, 1, 2))            # single NHWC->NCHW pass at the end


# ----------------------------------------------------------------------------------
# Pure-JAX reference + self-test
# ----------------------------------------------------------------------------------
def _ref_convt(x, weight, bias):
    # Accurate pure-JAX reference of ConvTranspose2d(k=2, s=2), NCHW in/out.
    N, C, H, W = x.shape
    Cout = weight.shape[1]
    y = jnp.einsum("nchw,cdij->ndhiwj", x, weight,
                   precision=lax.Precision.HIGHEST).reshape(N, Cout, 2 * H, 2 * W)
    return y + bias[None, :, None, None]


if __name__ == "__main__":
    key = jax.random.PRNGKey(0)
    ks = jax.random.split(key, 9)
    up2d = jax.jit(up2d_forward)
    up2d_nhwc = jax.jit(up2d_forward_nhwc)

    # --- case 1: tiny channels -> VPU broadcast-FMA path (exact f32) -----------------
    N, C, H, W = 2, 4, 16, 16
    x = jax.random.normal(ks[0], (N, C, H, W), dtype=jnp.float32)
    t_feat = jnp.zeros((N, C, 2 * H, 2 * W), dtype=jnp.float32)      # only shape is used
    weight = jax.random.normal(ks[1], (C, C, 2, 2), dtype=jnp.float32) * 0.1
    bias = jax.random.normal(ks[2], (C,), dtype=jnp.float32) * 0.1

    out = jax.block_until_ready(up2d(x, t_feat, weight, bias))
    ref = _ref_convt(x, weight, bias)                                # diff = 0 -> no pad
    assert out.shape == (N, C, 2 * H, 2 * W)
    assert jnp.allclose(out, ref, atol=1e-4, rtol=1e-4)

    # quirky pad/crop behavior (diff_h used as left pad of W; H never padded)
    t_small = jnp.zeros((N, C, 2 * H - 3, 2 * W - 2), dtype=jnp.float32)
    out_p = jax.block_until_ready(up2d(x, t_small, weight, bias))
    ref_p = lax.pad(ref, jnp.float32(0),
                    [(0, 0, 0), (0, 0, 0), (0, 0, 0), (2, 1, 0)])    # left=3-3//2, right=2-2//2
    assert out_p.shape == ref_p.shape
    assert jnp.allclose(out_p, ref_p, atol=1e-4, rtol=1e-4)

    # --- case 2: larger channels -> fused MXU GEMM; N=1 exercises >=4 grid steps -----
    # (loose tolerance: default TPU matmul precision on the f32 MXU path)
    N2, C2, H2, W2 = 1, 64, 8, 8
    x2 = jax.random.normal(ks[3], (N2, C2, H2, W2), dtype=jnp.float32)
    t2 = jnp.zeros((N2, C2, 2 * H2, 2 * W2), dtype=jnp.float32)
    w2 = jax.random.normal(ks[4], (C2, C2, 2, 2), dtype=jnp.float32) * 0.05
    b2 = jax.random.normal(ks[5], (C2,), dtype=jnp.float32) * 0.05

    out2 = jax.block_until_ready(up2d(x2, t2, w2, b2))
    ref2 = _ref_convt(x2, w2, b2)
    assert out2.shape == (N2, C2, 2 * H2, 2 * W2)
    assert jnp.allclose(out2, ref2, atol=2e-2, rtol=2e-2)

    # NHWC fast path (zero layout transposes) matches the NCHW wrapper exactly
    out2_nhwc = jax.block_until_ready(
        up2d_nhwc(jnp.transpose(x2, (0, 2, 3, 1)),
                  jnp.transpose(t2, (0, 2, 3, 1)), w2, b2))
    assert jnp.allclose(out2_nhwc, jnp.transpose(out2, (0, 2, 3, 1)),
                        atol=1e-6, rtol=1e-6)

    # --- case 3: odd W -> fused path with row-sliced stores (no XLA pixel shuffle) ---
    N3, C3, H3, W3 = 1, 8, 6, 6
    x3 = jax.random.normal(ks[6], (N3, C3, H3, W3), dtype=jnp.float32)
    t3 = jnp.zeros((N3, C3, 2 * H3, 2 * W3), dtype=jnp.float32)
    w3 = jax.random.normal(ks[7], (C3, C3, 2, 2), dtype=jnp.float32) * 0.1
    b3 = jax.random.normal(ks[8], (C3,), dtype=jnp.float32) * 0.1

    out3 = jax.block_until_ready(up2d(x3, t3, w3, b3))
    ref3 = _ref_convt(x3, w3, b3)
    assert out3.shape == (N3, C3, 2 * H3, 2 * W3)
    assert jnp.allclose(out3, ref3, atol=2e-2, rtol=2e-2)

    print("KERNEL_OK")
</pallas_src>

<mosaic_0001>
module attributes {stable_mosaic.version = 11 : i64} {
  func.func @kernel(%arg0: i32, %arg1: i32, %arg2: memref<1x128x4xf32, #tpu.memory_space<vmem>>, %arg3: memref<4x16xf32, #tpu.memory_space<vmem>>, %arg4: memref<1x16xf32, #tpu.memory_space<vmem>>, %arg5: memref<1x8x2x16x8xf32, #tpu.memory_space<vmem>>) attributes {dimension_semantics = [#tpu.dimension_semantics<parallel>, #tpu.dimension_semantics<parallel>], iteration_bounds = array<i64: 2, 2>, scalar_prefetch = 0 : i64, scratch_operands = 0 : i64, tpu.core_type = #tpu.core_type<tc>, window_params = [{transform_indices = @transform_0, window_bounds = array<i64: 1, 128, 4>}, {pipeline_mode = #tpu.pipeline_mode<synchronous>, transform_indices = @transform_1, window_bounds = array<i64: 4, 16>}, {pipeline_mode = #tpu.pipeline_mode<synchronous>, transform_indices = @transform_2, window_bounds = array<i64: 1, 16>}, {transform_indices = @transform_3, window_bounds = array<i64: 1, 8, 2, 16, 8>}]} {
    %c0 = arith.constant 0 : index
    %c0_0 = arith.constant 0 : index
    %c0_1 = arith.constant 0 : index
    %0 = vector.load %arg2[%c0, %c0_0, %c0_1] : memref<1x128x4xf32, #tpu.memory_space<vmem>>, vector<1x128x4xf32>
    %1 = vector.shape_cast %0 : vector<1x128x4xf32> to vector<128x4xf32>
    %c0_2 = arith.constant 0 : index
    %c0_3 = arith.constant 0 : index
    %2 = vector.load %arg3[%c0_2, %c0_3] : memref<4x16xf32, #tpu.memory_space<vmem>>, vector<4x16xf32>
    %3 = vector.extract_strided_slice %1 {offsets = [0, 0], sizes = [128, 1], strides = [1, 1]} : vector<128x4xf32> to vector<128x1xf32>
    %4 = vector.extract_strided_slice %2 {offsets = [0, 0], sizes = [1, 16], strides = [1, 1]} : vector<4x16xf32> to vector<1x16xf32>
    %5 = vector.broadcast %3 : vector<128x1xf32> to vector<128x16xf32>
    %6 = vector.broadcast %4 : vector<1x16xf32> to vector<128x16xf32>
    %7 = arith.mulf %5, %6 : vector<128x16xf32>
    %8 = vector.extract_strided_slice %1 {offsets = [0, 1], sizes = [128, 1], strides = [1, 1]} : vector<128x4xf32> to vector<128x1xf32>
    %9 = vector.extract_strided_slice %2 {offsets = [1, 0], sizes = [1, 16], strides = [1, 1]} : vector<4x16xf32> to vector<1x16xf32>
    %10 = vector.broadcast %8 : vector<128x1xf32> to vector<128x16xf32>
    %11 = vector.broadcast %9 : vector<1x16xf32> to vector<128x16xf32>
    %12 = arith.mulf %10, %11 : vector<128x16xf32>
    %13 = arith.addf %7, %12 : vector<128x16xf32>
    %14 = vector.extract_strided_slice %1 {offsets = [0, 2], sizes = [128, 1], strides = [1, 1]} : vector<128x4xf32> to vector<128x1xf32>
    %15 = vector.extract_strided_slice %2 {offsets = [2, 0], sizes = [1, 16], strides = [1, 1]} : vector<4x16xf32> to vector<1x16xf32>
    %16 = vector.broadcast %14 : vector<128x1xf32> to vector<128x16xf32>
    %17 = vector.broadcast %15 : vector<1x16xf32> to vector<128x16xf32>
    %18 = arith.mulf %16, %17 : vector<128x16xf32>
    %19 = arith.addf %13, %18 : vector<128x16xf32>
    %20 = vector.extract_strided_slice %1 {offsets = [0, 3], sizes = [128, 1], strides = [1, 1]} : vector<128x4xf32> to vector<128x1xf32>
    %21 = vector.extract_strided_slice %2 {offsets = [3, 0], sizes = [1, 16], strides = [1, 1]} : vector<4x16xf32> to vector<1x16xf32>
    %22 = vector.broadcast %20 : vector<128x1xf32> to vector<128x16xf32>
    %23 = vector.broadcast %21 : vector<1x16xf32> to vector<128x16xf32>
    %24 = arith.mulf %22, %23 : vector<128x16xf32>
    %25 = arith.addf %19, %24 : vector<128x16xf32>
    %c0_4 = arith.constant 0 : index
    %c0_5 = arith.constant 0 : index
    %26 = vector.load %arg4[%c0_4, %c0_5] : memref<1x16xf32, #tpu.memory_space<vmem>>, vector<1x16xf32>
    %27 = vector.broadcast %26 : vector<1x16xf32> to vector<128x16xf32>
    %28 = arith.addf %25, %27 : vector<128x16xf32>
    %29 = vector.extract_strided_slice %28 {offsets = [0, 0], sizes = [128, 8], strides = [1, 1]} : vector<128x16xf32> to vector<128x8xf32>
    %30 = vector.shape_cast %29 : vector<128x8xf32> to vector<8x16x8xf32>
    %c0_6 = arith.constant 0 : index
    %c0_7 = arith.constant 0 : index
    %c0_8 = arith.constant 0 : index
    %c0_9 = arith.constant 0 : index
    %c0_10 = arith.constant 0 : index
    %31 = vector.load %arg5[%c0_6, %c0_7, %c0_8, %c0_9, %c0_10] : memref<1x8x2x16x8xf32, #tpu.memory_space<vmem>>, vector<1x8x1x16x8xf32>
    %32 = vector.shape_cast %31 : vector<1x8x1x16x8xf32> to vector<8x16x8xf32>
    %33 = vector.shape_cast %30 : vector<8x16x8xf32> to vector<1x8x1x16x8xf32>
    tpu.vector_store %arg5[%c0_6, %c0_7, %c0_8, %c0_9, %c0_10], %33 {strides = array<i32>} : memref<1x8x2x16x8xf32, #tpu.memory_space<vmem>>, vector<1x8x1x16x8xf32>,
    %34 = vector.extract_strided_slice %28 {offsets = [0, 8], sizes = [128, 8], strides = [1, 1]} : vector<128x16xf32> to vector<128x8xf32>
    %35 = vector.shape_cast %34 : vector<128x8xf32> to vector<8x16x8xf32>
    %c0_11 = arith.constant 0 : index
    %c0_12 = arith.constant 0 : index
    %c1 = arith.constant 1 : index
    %c0_13 = arith.constant 0 : index
    %c0_14 = arith.constant 0 : index
    %36 = vector.load %arg5[%c0_11, %c0_12, %c1, %c0_13, %c0_14] : memref<1x8x2x16x8xf32, #tpu.memory_space<vmem>>, vector<1x8x1x16x8xf32>
    %37 = vector.shape_cast %36 : vector<1x8x1x16x8xf32> to vector<8x16x8xf32>
    %38 = vector.shape_cast %35 : vector<8x16x8xf32> to vector<1x8x1x16x8xf32>
    tpu.vector_store %arg5[%c0_11, %c0_12, %c1, %c0_13, %c0_14], %38 {strides = array<i32>} : memref<1x8x2x16x8xf32, #tpu.memory_space<vmem>>, vector<1x8x1x16x8xf32>,
    return
  }
  func.func @transform_0(%arg0: i32, %arg1: i32) -> (i32, i32, i32) {
    %c0_i32 = arith.constant 0 : i32
    %c0_i32_0 = arith.constant 0 : i32
    return %arg0, %arg1, %c0_i32 : i32, i32, i32
  }
  func.func @transform_1(%arg0: i32, %arg1: i32) -> (i32, i32) {
    %c0_i32 = arith.constant 0 : i32
    %c0_i32_0 = arith.constant 0 : i32
    %c0_i32_1 = arith.constant 0 : i32
    return %c0_i32, %c0_i32_0 : i32, i32
  }
  func.func @transform_2(%arg0: i32, %arg1: i32) -> (i32, i32) {
    %c0_i32 = arith.constant 0 : i32
    %c0_i32_0 = arith.constant 0 : i32
    %c0_i32_1 = arith.constant 0 : i32
    return %c0_i32, %c0_i32_0 : i32, i32
  }
  func.func @transform_3(%arg0: i32, %arg1: i32) -> (i32, i32, i32, i32, i32) {
    %c0_i32 = arith.constant 0 : i32
    %c0_i32_0 = arith.constant 0 : i32
    %c0_i32_1 = arith.constant 0 : i32
    %c0_i32_2 = arith.constant 0 : i32
    return %arg0, %arg1, %c0_i32, %c0_i32_0, %c0_i32_1 : i32, i32, i32, i32, i32
  }
}

</mosaic_0001>

<bundles_post_ra>
// kernel: tile.8
= control target key start
LH: loop header
LB: loop body
LE: loop exit
PB: predicated region body
PF: predicated region fallthrough
CT: control target
= control target key end

     0   :  { %s22_s0 = inlined_call_operand.vmem [shape: f32[4], index: 0, kind: input, shape index: {}]   ;;  %s23_s1 = inlined_call_operand.vmem [shape: f32[4,4], index: 1, kind: output, shape index: {}]  }
   0x1   :  { %v4_v0 = vld [vmem:[%s22_s0] ss:$0 sm:$0xff] }
   0x2   :  { %5 = vst [vmem:[%s23_s1] sm:$0xf] %v4_v0 }

// kernel: tile.9
= control target key start
LH: loop header
LB: loop body
LE: loop exit
PB: predicated region body
PF: predicated region fallthrough
CT: control target
= control target key end

     0   :  { %vm7_vm0 = vcmask 31744   ;;  %s37_s8 = smov 4   ;;  %s38_s9 = smov 8   ;;  %vm13_vm1 = vcmask 130144   ;;  %vm19_vm2 = vcmask 97344   ;;  %vm25_vm3 = vcmask 64544   ;;  %s55_s0 = inlined_call_operand.vmem [shape: f32[4,4], index: 0, kind: input, shape index: {}]   ;;  %s56_s1 = inlined_call_operand.vmem [shape: f32[1,16], index: 1, kind: output, shape index: {}]  }
   0x1   :  { %v4_v0 = vld [vmem:[%s55_s0] sm:$0xf]  ;;  %s36_s0 = smov 12  }
   0x2   :  { %5 = vst [vmem:[#allocation1] sm:$0xf] %v4_v0 }
   0x9   :  { %v10_v1 = vld [vmem:[#allocation1 + $0x3] sm:$0x1]   ;;  %v22_v2 = vld [vmem:[#allocation1 + $0x1] sm:$0x1]   ;;  %v6_v3 = vld [vmem:[#allocation1] sm:$0x1]  }
   0xa   :  { %11 = vrot.lane.b32.xlu0 %v10_v1, %s36_s0  ;;  %23 = vrot.lane.b32.xlu1 %v22_v2, %s37_s8  ;;  %v16_v4 = vld [vmem:[#allocation1 + $0x2] sm:$0x1]   ;;  %8 = vst.msk [vmem:[#allocation0] sm:$0x1] %vm7_vm0, %v6_v3  }
   0xe   :  { %17 = vrot.lane.b32.xlu0 %v16_v4, %s38_s9 }
  0x7c   :  { %v12_v5 = vpop.permute.xlu0 %11   ;;  %v24_v6 = vpop.permute.xlu1 %23  }
  0x7d   :  { %14 = vst.msk [vmem:[#allocation0] sm:$0x1] %vm13_vm1, %v12_v5  }
  0x80   :  { %v18_v7 = vpop.permute.xlu0 %17  }
  0x81   :  { %20 = vst.msk [vmem:[#allocation0] sm:$0x1] %vm19_vm2, %v18_v7  }
  0x82   :  { %26 = vst.msk [vmem:[#allocation0] sm:$0x1] %vm25_vm3, %v24_v6  }
  0x89   :  { %v30_v8 = vld [vmem:[#allocation0] sm:$0x1] }
  0x8a   :  { %32 = vst [vmem:[%s56_s1] sm:$0x1] %v30_v8 }

// kernel: up2d_forward.1
= control target key start
LH: loop header
LB: loop body
LE: loop exit
PB: predicated region body
PF: predicated region fallthrough
CT: control target
= control target key end

     0   :  { %s995_s12 = smov 0   ;;  %s997_s13 = smov 0   ;;  %s1403_s0 = inlined_call_operand.vmem [shape: f32[2,256,4], index: 0, kind: input, shape index: {}]   ;;  %s1404_s1 = inlined_call_operand.vmem [shape: f32[4,16], index: 1, kind: input, shape index: {}]   ;;  %s1405_s2 = inlined_call_operand.vmem [shape: f32[1,16], index: 2, kind: input, shape index: {}]   ;;  %s1406_s3 = inlined_call_operand.vmem [shape: f32[2,16,2,16,8], index: 3, kind: output, shape index: {}]  }
   0x1   :  { %s999_s14 = smov 0   ;;  %s1001_s15 = smov 0  }
   0x2   :  { %s1003_s16 = smov 0  }
   0x3 LB: > { %s22_s17 = sadd.s32 1, %s960_s14  ;;  %s25_s18 = sadd.s32 1, %s964_s15  ;;  %s968_s16 = sphi %s1003_s16, %s13_s16   ;;  %s964_s15 = sphi %s1001_s15, %s1410_s15   ;;  %s960_s14 = sphi %s999_s14, %s1409_s14   ;;  %s956_s13 = sphi %s997_s13, %s1408_s13   ;;  %s952_s12 = sphi %s995_s12, %s1407_s12  }
   0x4   : > { %p23_p0 = scmp.ge.s32.totalorder %s22_s17, 2  ;;  %p850_p1 = scmp.ge.s32.totalorder %s968_s16, 1 }
   0x5   : > { %p158_p2 = scmp.lt.s32.totalorder %s968_s16, 5 }
   0x6   : > { %s1412_s17 = smov (%p23_p0, %s22_s17), 0  ;;  %s1414_s18 = smov (!%p23_p0, %s25_s18), %s964_s15 }
   0x7   : > { %p159_p3 = pnand %p850_p1, %p158_p2  ;;  %p27_p4 = scmp.ge.s32.totalorder %s1414_s18, 2 }
   0x8   : > { %s851_s19 = sshll.u32 (!%p159_p3), %s952_s12, 4  ;;  %p192_p5 = scmp.lt.s32.totalorder (!%p159_p3), %s956_s13, 1  ;;  %v970_v0 = vmov (!%p159_p3), 0   ;;  %v971_v17 = vmov (!%p159_p3), 1   ;;  %v972_v18 = vmov (!%p159_p3), 2   ;;  %v973_v19 = vmov (!%p159_p3), 3  }
   0x9   : > { %s1416_s18 = smov (%p27_p4, %s1414_s18), 0  ;;  %162 = sbr.rel (%p159_p3) target bundleno = 403 (0x193), region = 32 }
   0xa   : > { %923 = vset.pattern.permute.xlu1 (!%p159_p3), %v970_v0  ;;  %922 = vset.pattern.permute.xlu0 (!%p159_p3), %v970_v0  ;;  %p194_p6 = scmp.lt.s32.totalorder (!%p159_p3), %s851_s19, 31  ;;  %v309_v30 = vlaneseq (!%p159_p3)  ;;  %v1123_v40 = vld [vmem:[%s1404_s1] sm:$0xf] (!%p159_p3)  ;;  %s854_s28 = sshll.u32 (!%p159_p3), %s952_s12, 3  ;;  %vm652_vm0 = vcmask (!%p159_p3), 64512  }
   0xb   : > { %p204_p7 = scmp.lt.s32.totalorder (!%p159_p3), %s854_s28, 15  ;;  %s974_s11 = smov (!%p159_p3), 120  }
   0xc   : > { %v1112_v33 = vshrl.u32 (!%p159_p3), %v309_v30, 7 }
   0xe   : > { %v395_v36 = vsub.s32 (!%p159_p3), 1, %v1112_v33  ;;  %v311_v37 = vsub.s32 (!%p159_p3), 0, %v1112_v33 }
  0x10   : > { %s1418_s13 = smov (!%p192_p5, %s956_s13), 1  ;;  %s1420_s19 = smov (!%p194_p6, %s851_s19), 31  ;;  %v1126_v41 = vrot.slane %v1123_v40, %v395_v36  ;;  %v1129_v42 = vrot.slane %v1123_v40, %v311_v37  ;;  %v495_v37 = vsub.s32 2, %v1112_v33 }
  0x11   : > { %s852_s20 = sshll.u32 %s1418_s13, 5  ;;  %s1422_s28 = smov (!%p204_p7, %s854_s28), 15 }
  0x12   : > { %s197_s21 = sadd.s32 %s852_s20, %s1420_s19  ;;  %s855_s29 = sshll.u32 %s1422_s28, 2 }
  0x13   : > { %s853_s22 = sshll.u32 %s197_s21, 3  ;;  %s856_s30 = sshll.u32 %s1418_s13, 6 }
  0x14   : > { %s199_s25 = scalar_lea.vmem %s1403_s0, %s853_s22  ;;  %s208_s4 = sadd.s32 %s856_s30, %s855_s29 }
  0x15   : > { %v1034_v1 = vld [vmem:[%s199_s25 + $0x10] sm:$0xff]  ;;  %v1036_v2 = vld [vmem:[%s199_s25] sm:$0xff]  ;;  %v1040_v3 = vld [vmem:[%s199_s25 + $0x18] sm:$0xff]  ;;  %s857_s5 = sshll.u32 %s208_s4, 3 }
  0x16   : > { %241 = vperm.xlu1 %923, %v1034_v1   ;;  %231 = vperm.xlu0 %922, %v1036_v2   ;;  %v1042_v4 = vld [vmem:[%s199_s25 + $0x8] sm:$0xff]  ;;  %v1048_v6 = vld [vmem:[%s199_s25 + $0x20] sm:$0xff]  ;;  %v1052_v7 = vld [vmem:[%s199_s25 + $0x38] sm:$0xff]  ;;  %s1225_s10 = scalar_lea.vmem %s1406_s3, %s857_s5 }
  0x17   : > { %v1046_v5 = vld [vmem:[%s199_s25 + $0x28] sm:$0xff]  ;;  %v1054_v8 = vld [vmem:[%s199_s25 + $0x30] sm:$0xff]  ;;  %v1060_v10 = vld [vmem:[%s199_s25 + $0x40] sm:$0xff] }
  0x18   : > { %v1058_v9 = vld [vmem:[%s199_s25 + $0x48] sm:$0xff]  ;;  %v223_v11 = vld [vmem:[%s199_s25 + $0x58] sm:$0xff]  ;;  %v1064_v12 = vld [vmem:[%s199_s25 + $0x50] sm:$0xff] }
  0x19   : > { %v225_v13 = vld [vmem:[%s199_s25 + $0x68] sm:$0xff]  ;;  %v224_v14 = vld [vmem:[%s199_s25 + $0x60] sm:$0xff]  ;;  %v227_v15 = vld [vmem:[%s199_s25 + $0x78] sm:$0xff] }
  0x1a   : > { %246 = vperm.xlu1 %923, %v1040_v3   ;;  %236 = vperm.xlu0 %922, %v1042_v4   ;;  %v226_v16 = vld [vmem:[%s199_s25 + $0x70] sm:$0xff] }
  0x1e   : > { %256 = vperm.xlu1 %923, %v1046_v5   ;;  %251 = vperm.xlu0 %922, %v1048_v6  }
  0x22   : > { %266 = vperm.xlu1 %923, %v1052_v7   ;;  %261 = vperm.xlu0 %922, %v1054_v8  }
  0x26   : > { %276 = vperm.xlu1 %923, %v1058_v9   ;;  %271 = vperm.xlu0 %922, %v1060_v10  }
  0x2a   : > { %286 = vperm.xlu1 %923, %v223_v11   ;;  %281 = vperm.xlu0 %922, %v1064_v12  }
  0x2e   : > { %296 = vperm.xlu1 %923, %v225_v13   ;;  %291 = vperm.xlu0 %922, %v224_v14  }
  0x32   : > { %306 = vperm.xlu1 %923, %v227_v15   ;;  %301 = vperm.xlu0 %922, %v226_v16  }
  0x36   : > { %925 = vset.pattern.permute.xlu1 %v971_v17  ;;  %924 = vset.pattern.permute.xlu0 %v971_v17 }
  0x37   : > { %334 = vperm.xlu1 %925, %v1042_v4   ;;  %330 = vperm.xlu0 %924, %v1036_v2  }
  0x3b   : > { %338 = vperm.xlu1 %925, %v1034_v1   ;;  %342 = vperm.xlu0 %924, %v1040_v3  }
  0x3f   : > { %346 = vperm.xlu1 %925, %v1048_v6   ;;  %350 = vperm.xlu0 %924, %v1046_v5  }
  0x43   : > { %354 = vperm.xlu1 %925, %v1054_v8   ;;  %358 = vperm.xlu0 %924, %v1052_v7  }
  0x47   : > { %362 = vperm.xlu1 %925, %v1060_v10   ;;  %366 = vperm.xlu0 %924, %v1058_v9  }
  0x4b   : > { %370 = vperm.xlu1 %925, %v1064_v12   ;;  %374 = vperm.xlu0 %924, %v223_v11  }
  0x4f   : > { %378 = vperm.xlu1 %925, %v224_v14   ;;  %382 = vperm.xlu0 %924, %v225_v13  }
  0x53   : > { %386 = vperm.xlu1 %925, %v226_v16   ;;  %390 = vperm.xlu0 %924, %v227_v15  }
  0x57   : > { %926 = vset.pattern.permute.xlu1 %v972_v18  ;;  %927 = vset.pattern.permute.xlu0 %v972_v18 }
  0x58   : > { %430 = vperm.xlu1 %926, %v1036_v2   ;;  %434 = vperm.xlu0 %927, %v1042_v4  }
  0x5c   : > { %438 = vperm.xlu1 %926, %v1034_v1   ;;  %446 = vperm.xlu0 %927, %v1048_v6  }
  0x60   : > { %442 = vperm.xlu1 %926, %v1040_v3   ;;  %454 = vperm.xlu0 %927, %v1054_v8  }
  0x64   : > { %450 = vperm.xlu1 %926, %v1046_v5   ;;  %462 = vperm.xlu0 %927, %v1060_v10  }
  0x68   : > { %458 = vperm.xlu1 %926, %v1052_v7   ;;  %470 = vperm.xlu0 %927, %v1064_v12  }
  0x6c   : > { %466 = vperm.xlu1 %926, %v1058_v9   ;;  %478 = vperm.xlu0 %927, %v224_v14  }
  0x70   : > { %474 = vperm.xlu1 %926, %v223_v11   ;;  %486 = vperm.xlu0 %927, %v226_v16  }
  0x74   : > { %482 = vperm.xlu1 %926, %v225_v13   ;;  %928 = vset.pattern.permute.xlu0 %v973_v19 }
  0x75   : > { %530 = vperm.xlu0 %928, %v1036_v2  }
  0x78   : > { %490 = vperm.xlu1 %926, %v227_v15  }
  0x79   : > { %542 = vperm.xlu0 %928, %v1040_v3  }
  0x7c   : > { %929 = vset.pattern.permute.xlu1 %v973_v19 }
  0x7d   : > { %534 = vperm.xlu1 %929, %v1042_v4   ;;  %550 = vperm.xlu0 %928, %v1046_v5  }
  0x81   : > { %538 = vperm.xlu1 %929, %v1034_v1   ;;  %558 = vperm.xlu0 %928, %v1052_v7  }
  0x85   : > { %546 = vperm.xlu1 %929, %v1048_v6   ;;  %566 = vperm.xlu0 %928, %v1058_v9  }
  0x89   : > { %554 = vperm.xlu1 %929, %v1054_v8   ;;  %574 = vperm.xlu0 %928, %v223_v11  }
  0x8d   : > { %562 = vperm.xlu1 %929, %v1060_v10   ;;  %582 = vperm.xlu0 %928, %v225_v13  }
  0x91   : > { %570 = vperm.xlu1 %929, %v1064_v12   ;;  %590 = vperm.xlu0 %928, %v227_v15  }
  0x95   : > { %v242_v20 = vpop.permute.xlu1 %241  ;;  %578 = vperm.xlu1 %929, %v224_v14   ;;  %v1100_v21 = vpop.permute.xlu0 %231 }
  0x96   : > { %v315_v50 = vmul.f32 %v1129_v42, %v242_v20 }
  0x99   : > { %v1102_v22 = vpop.permute.xlu1 %246  ;;  %586 = vperm.xlu1 %929, %v226_v16   ;;  %v237_v23 = vpop.permute.xlu0 %236 }
  0x9a   : > { %v314_v45 = vmul.f32 %v1129_v42, %v237_v23 }
  0x9d   : > { %v1104_v24 = vpop.permute.xlu1 %256  ;;  %v252_v25 = vpop.permute.xlu0 %251 }
  0x9e   : > { %v317_v55 = vmul.f32 %v1129_v42, %v252_v25 }
  0xa1   : > { %v1106_v26 = vpop.permute.xlu1 %266  ;;  %v262_v27 = vpop.permute.xlu0 %261 }
  0xa2   : > { %v319_v60 = vmul.f32 %v1129_v42, %v262_v27 }
  0xa5   : > { %v1108_v28 = vpop.permute.xlu1 %276  ;;  %v272_v29 = vpop.permute.xlu0 %271 }
  0xa6   : > { %v321_v1 = vmul.f32 %v1129_v42, %v272_v29 }
  0xa9   : > { %v1110_v31 = vpop.permute.xlu1 %286  ;;  %v282_v32 = vpop.permute.xlu0 %281 }
  0xaa   : > { %v323_v6 = vmul.f32 %v1129_v42, %v282_v32 }
  0xad   : > { %v1114_v34 = vpop.permute.xlu1 %296  ;;  %v292_v35 = vpop.permute.xlu0 %291 }
  0xae   : > { %v325_v11 = vmul.f32 %v1129_v42, %v292_v35 }
  0xb1   : > { %v1118_v38 = vpop.permute.xlu1 %306  ;;  %v302_v39 = vpop.permute.xlu0 %301 }
  0xb2   : > { %v327_v16 = vmul.f32 %v1129_v42, %v302_v39 }
  0xb6   : > { %v335_v43 = vpop.permute.xlu1 %334  ;;  %v331_v44 = vpop.permute.xlu0 %330 }
  0xb7   : > { %v398_v46 = vmul.f32 %v1126_v41, %v335_v43 }
  0xb9   : > { %v1133_v47 = vadd.f32 %v398_v46, %v314_v45  ;;  %v1188_v45 = vrot.slane %v1123_v40, %v495_v37  ;;  %v595_v46 = vsub.s32 3, %v1112_v33 }
  0xba   : > { %v339_v48 = vpop.permute.xlu1 %338  ;;  %v343_v49 = vpop.permute.xlu0 %342 }
  0xbb   : > { %v399_v51 = vmul.f32 %v1126_v41, %v339_v48  ;;  %v397_v48 = vmul.f32 %v1126_v41, %v331_v44  ;;  %v400_v33 = vmul.f32 %v1126_v41, %v343_v49 }
  0xbd   : > { %v1137_v52 = vadd.f32 %v399_v51, %v315_v50 }
  0xbe   : > { %v347_v53 = vpop.permute.xlu1 %346  ;;  %v1139_v54 = vpop.permute.xlu0 %350 }
  0xbf   : > { %v401_v56 = vmul.f32 %v1126_v41, %v347_v53  ;;  %v313_v53 = vmul.f32 %v1129_v42, %v1100_v21  ;;  %v402_v49 = vmul.f32 %v1126_v41, %v1139_v54 }
  0xc1   : > { %v1143_v57 = vadd.f32 %v401_v56, %v317_v55  ;;  %v1201_v56 = vrot.slane %v1123_v40, %v595_v46  ;;  %v1213_v40 = vld [vmem:[%s1405_s2] ss:$0 sm:$0xff] }
  0xc2   : > { %v355_v58 = vpop.permute.xlu1 %354  ;;  %v1145_v59 = vpop.permute.xlu0 %358 }
  0xc3   : > { %v403_v61 = vmul.f32 %v1126_v41, %v355_v58  ;;  %v413_v58 = vadd.f32 %v397_v48, %v313_v53 }
  0xc5   : > { %v1149_v62 = vadd.f32 %v403_v61, %v319_v60  ;;  %v316_v61 = vmul.f32 %v1129_v42, %v1102_v22  ;;  %v318_v22 = vmul.f32 %v1129_v42, %v1104_v24  ;;  %v404_v24 = vmul.f32 %v1126_v41, %v1145_v59 }
  0xc6   : > { %v363_v63 = vpop.permute.xlu1 %362  ;;  %v1151_v0 = vpop.permute.xlu0 %366 }
  0xc7   : > { %v405_v2 = vmul.f32 %v1126_v41, %v363_v63 }
  0xc9   : > { %v1155_v3 = vadd.f32 %v405_v2, %v321_v1  ;;  %v416_v2 = vadd.f32 %v400_v33, %v316_v61  ;;  %v406_v33 = vmul.f32 %v1126_v41, %v1151_v0 }
  0xca   : > { %v371_v4 = vpop.permute.xlu1 %370  ;;  %v1157_v5 = vpop.permute.xlu0 %374 }
  0xcb   : > { %v407_v7 = vmul.f32 %v1126_v41, %v371_v4 }
  0xcd   : > { %v1161_v8 = vadd.f32 %v407_v7, %v323_v6 }
  0xce   : > { %v379_v9 = vpop.permute.xlu1 %378  ;;  %v1163_v10 = vpop.permute.xlu0 %382 }
  0xcf   : > { %v409_v12 = vmul.f32 %v1126_v41, %v379_v9 }
  0xd1   : > { %v1167_v13 = vadd.f32 %v409_v12, %v325_v11 }
  0xd2   : > { %v387_v14 = vpop.permute.xlu1 %386  ;;  %v1169_v15 = vpop.permute.xlu0 %390 }
  0xd3   : > { %v411_v17 = vmul.f32 %v1126_v41, %v387_v14 }
  0xd5   : > { %v1173_v18 = vadd.f32 %v411_v17, %v327_v16  ;;  %v418_v16 = vadd.f32 %v402_v49, %v318_v22 }
  0xd7   : > { %v431_v19 = vpop.permute.xlu1 %430  ;;  %v435_v20 = vpop.permute.xlu0 %434 }
  0xd8   : > { %v497_v55 = vmul.f32 %v1188_v45, %v431_v19  ;;  %v498_v7 = vmul.f32 %v1188_v45, %v435_v20  ;;  %v320_v19 = vmul.f32 %v1129_v42, %v1106_v26  ;;  %v322_v26 = vmul.f32 %v1129_v42, %v1108_v28 }
  0xda   : > { %v513_v63 = vadd.f32 %v497_v55, %v413_v58  ;;  %v514_v20 = vadd.f32 %v498_v7, %v1133_v47  ;;  %v420_v58 = vadd.f32 %v404_v24, %v320_v19 }
  0xdb   : > { %v439_v23 = vpop.permute.xlu1 %438  ;;  %v1175_v25 = vpop.permute.xlu0 %446 }
  0xdf   : > { %v443_v27 = vpop.permute.xlu1 %442  ;;  %v1177_v29 = vpop.permute.xlu0 %454 }
  0xe0   : > { %v500_v1 = vmul.f32 %v1188_v45, %v443_v27  ;;  %v499_v27 = vmul.f32 %v1188_v45, %v439_v23 }
  0xe2   : > { %v516_v11 = vadd.f32 %v500_v1, %v416_v2 }
  0xe3   : > { %v451_v30 = vpop.permute.xlu1 %450  ;;  %v1179_v32 = vpop.permute.xlu0 %462 }
  0xe4   : > { %v502_v12 = vmul.f32 %v1188_v45, %v451_v30 }
  0xe6   : > { %v518_v59 = vadd.f32 %v502_v12, %v418_v16 }
  0xe7   : > { %v459_v35 = vpop.permute.xlu1 %458  ;;  %v1182_v36 = vpop.permute.xlu0 %470 }
  0xe8   : > { %v504_v30 = vmul.f32 %v1188_v45, %v459_v35  ;;  %v515_v35 = vadd.f32 %v499_v27, %v1137_v52  ;;  %v408_v52 = vmul.f32 %v1126_v41, %v1157_v5  ;;  %v505_v27 = vmul.f32 %v1188_v45, %v1179_v32 }
  0xe9   : > { %v328_v32 = vmul.f32 %v1129_v42, %v1118_v38 }
  0xea   : > { %v520_v61 = vadd.f32 %v504_v30, %v420_v58 }
  0xeb   : > { %v467_v39 = vpop.permute.xlu1 %466  ;;  %v1185_v43 = vpop.permute.xlu0 %478 }
  0xef   : > { %v1192_v50 = vpop.permute.xlu1 %474  ;;  %v1194_v51 = vpop.permute.xlu0 %486 }
  0xf0   : > { %v508_v5 = vmul.f32 %v1188_v45, %v1192_v50 }
  0xf3   : > { %v1204_v60 = vpop.permute.xlu1 %482 }
  0xf4   : > { %v531_v44 = vpop.permute.xlu0 %530 }
  0xf5   : > { %v597_v21 = vmul.f32 %v1201_v56, %v531_v44  ;;  %v501_v44 = vmul.f32 %v1188_v45, %v1175_v25  ;;  %v324_v25 = vmul.f32 %v1129_v42, %v1110_v31 }
  0xf7   : > { %v613_v4 = vadd.f32 %v597_v21, %v513_v63  ;;  %v1217_v6 = vpop.permute.xlu1 %490  ;;  %v506_v63 = vmul.f32 %v1188_v45, %v467_v39  ;;  %v517_v39 = vadd.f32 %v501_v44, %v1143_v57  ;;  %v410_v57 = vmul.f32 %v1126_v41, %v1163_v10 }
  0xf8   : > { %v543_v9 = vpop.permute.xlu0 %542  ;;  %v512_v38 = vmul.f32 %v1188_v45, %v1217_v6  ;;  %v509_v6 = vmul.f32 %v1188_v45, %v1185_v43 }
  0xf9   : > { %v600_v54 = vmul.f32 %v1201_v56, %v543_v9  ;;  %v636_v14 = vadd.f32 %v1213_v40, %v613_v4  ;;  %v422_v4 = vadd.f32 %v406_v33, %v322_v26  ;;  %v503_v9 = vmul.f32 %v1188_v45, %v1177_v29 }
  0xfa   : > { %v326_v29 = vmul.f32 %v1129_v42, %v1114_v34  ;;  %v510_v34 = vmul.f32 %v1188_v45, %v1204_v60  ;;  %v521_v60 = vadd.f32 %v505_v27, %v1155_v3 }
  0xfb   : > { %v616_v17 = vadd.f32 %v600_v54, %v516_v11  ;;  %685 = vrot.lane.b32.xlu1 %v636_v14, %s974_s11  ;;  %653 = vst.msk [vmem:[%s1225_s10] sm:$0xff] %vm652_vm0, %v636_v14  ;;  %v522_v11 = vadd.f32 %v506_v63, %v422_v4  ;;  %v519_v50 = vadd.f32 %v503_v9, %v1149_v62 }
  0xfc   : > { %v535_v37 = vpop.permute.xlu1 %534  ;;  %v551_v46 = vpop.permute.xlu0 %550  ;;  %v412_v62 = vmul.f32 %v1126_v41, %v1169_v15  ;;  %v507_v41 = vmul.f32 %v1188_v45, %v1182_v36 }
  0xfd   : > { %v598_v48 = vmul.f32 %v1201_v56, %v535_v37  ;;  %v602_v53 = vmul.f32 %v1201_v56, %v551_v46  ;;  %v639_v55 = vadd.f32 %v1213_v40, %v616_v17  ;;  %v424_v17 = vadd.f32 %v408_v52, %v324_v25 }
  0xfe   : > { %v523_v36 = vadd.f32 %v507_v41, %v1161_v8  ;;  %v525_v8 = vadd.f32 %v509_v6, %v1167_v13 }
  0xff   : > { %v614_v47 = vadd.f32 %v598_v48, %v514_v20  ;;  %v618_v23 = vadd.f32 %v602_v53, %v518_v59  ;;  %656 = vst.msk [vmem:[%s1225_s10 + $0x28] sm:$0xff] %vm652_vm0, %v639_v55  ;;  %v524_v10 = vadd.f32 %v508_v5, %v424_v17 }
 0x100   : > { %v539_v1 = vpop.permute.xlu1 %538  ;;  %v559_v21 = vpop.permute.xlu0 %558 }
 0x101   : > { %v599_v0 = vmul.f32 %v1201_v56, %v539_v1  ;;  %v604_v28 = vmul.f32 %v1201_v56, %v559_v21  ;;  %v637_v2 = vadd.f32 %v1213_v40, %v614_v47  ;;  %v641_v49 = vadd.f32 %v1213_v40, %v618_v23 }
 0x103   : > { %v615_v22 = vadd.f32 %v599_v0, %v515_v35  ;;  %v620_v7 = vadd.f32 %v604_v28, %v520_v61  ;;  %687 = vrot.lane.b32.xlu0 %v637_v2, %s974_s11  ;;  %654 = vst.msk [vmem:[%s1225_s10 + $0x8] sm:$0xff] %vm652_vm0, %v637_v2  ;;  %658 = vst.msk [vmem:[%s1225_s10 + $0x48] sm:$0xff] %vm652_vm0, %v641_v49  ;;  %v428_v61 = vadd.f32 %v412_v62, %v328_v32 }
 0x104   : > { %v547_v31 = vpop.permute.xlu1 %546  ;;  %v567_v12 = vpop.permute.xlu0 %566 }
 0x105   : > { %v601_v54 = vmul.f32 %v1201_v56, %v547_v31  ;;  %v606_v14 = vmul.f32 %v1201_v56, %v567_v12  ;;  %v638_v24 = vadd.f32 %v1213_v40, %v615_v22  ;;  %v643_v16 = vadd.f32 %v1213_v40, %v620_v7 }
 0x106   : > { %v528_v1 = vadd.f32 %v512_v38, %v428_v61  ;;  %v511_v22 = vmul.f32 %v1188_v45, %v1194_v51 }
 0x107   : > { %v617_v19 = vadd.f32 %v601_v54, %v517_v39  ;;  %v622_v20 = vadd.f32 %v606_v14, %v522_v11  ;;  %655 = vst.msk [vmem:[%s1225_s10 + $0x20] sm:$0xff] %vm652_vm0, %v638_v24  ;;  %689 = vrot.lane.b32.xlu1 %v638_v24, %s974_s11  ;;  %691 = vrot.lane.b32.xlu0 %v639_v55, %s974_s11  ;;  %660 = vst.msk [vmem:[%s1225_s10 + $0x68] sm:$0xff] %vm652_vm0, %v643_v16 }
 0x108   : > { %v555_v30 = vpop.permute.xlu1 %554  ;;  %v575_v37 = vpop.permute.xlu0 %574  ;;  %v426_v55 = vadd.f32 %v410_v57, %v326_v29  ;;  %v527_v45 = vadd.f32 %v511_v22, %v1173_v18 }
 0x109   : > { %v603_v46 = vmul.f32 %v1201_v56, %v555_v30  ;;  %v608_v59 = vmul.f32 %v1201_v56, %v575_v37  ;;  %v640_v48 = vadd.f32 %v1213_v40, %v617_v19  ;;  %v645_v53 = vadd.f32 %v1213_v40, %v622_v20 }
 0x10a   : > { %v526_v15 = vadd.f32 %v510_v34, %v426_v55 }
 0x10b   : > { %v619_v58 = vadd.f32 %v603_v46, %v519_v50  ;;  %v624_v33 = vadd.f32 %v608_v59, %v524_v10  ;;  %657 = vst.msk [vmem:[%s1225_s10 + $0x40] sm:$0xff] %vm652_vm0, %v640_v48  ;;  %693 = vrot.lane.b32.xlu1 %v640_v48, %s974_s11  ;;  %695 = vrot.lane.b32.xlu0 %v641_v49, %s974_s11  ;;  %662 = vst.msk [vmem:[%s1225_s10 + $0x88] sm:$0xff] %vm652_vm0, %v645_v53 }
 0x10c   : > { %v563_v42 = vpop.permute.xlu1 %562  ;;  %v583_v26 = vpop.permute.xlu0 %582 }
 0x10d   : > { %v605_v47 = vmul.f32 %v1201_v56, %v563_v42  ;;  %v610_v23 = vmul.f32 %v1201_v56, %v583_v26  ;;  %v642_v35 = vadd.f32 %v1213_v40, %v619_v58  ;;  %v647_v44 = vadd.f32 %v1213_v40, %v624_v33 }
 0x10f   : > { %v621_v3 = vadd.f32 %v605_v47, %v521_v60  ;;  %v626_v63 = vadd.f32 %v610_v23, %v526_v15  ;;  %659 = vst.msk [vmem:[%s1225_s10 + $0x60] sm:$0xff] %vm652_vm0, %v642_v35  ;;  %697 = vrot.lane.b32.xlu1 %v642_v35, %s974_s11  ;;  %699 = vrot.lane.b32.xlu0 %v643_v16, %s974_s11  ;;  %664 = vst.msk [vmem:[%s1225_s10 + $0xa8] sm:$0xff] %vm652_vm0, %v647_v44 }
 0x110   : > { %v571_v21 = vpop.permute.xlu1 %570  ;;  %v591_v0 = vpop.permute.xlu0 %590 }
 0x111   : > { %v607_v28 = vmul.f32 %v1201_v56, %v571_v21  ;;  %v612_v2 = vmul.f32 %v1201_v56, %v591_v0  ;;  %v644_v49 = vadd.f32 %v1213_v40, %v621_v3  ;;  %v649_v4 = vadd.f32 %v1213_v40, %v626_v63 }
 0x113   : > { %v623_v52 = vadd.f32 %v607_v28, %v523_v36  ;;  %v628_v25 = vadd.f32 %v612_v2, %v528_v1  ;;  %661 = vst.msk [vmem:[%s1225_s10 + $0x80] sm:$0xff] %vm652_vm0, %v644_v49  ;;  %701 = vrot.lane.b32.xlu1 %v644_v49, %s974_s11  ;;  %703 = vrot.lane.b32.xlu0 %v645_v53, %s974_s11  ;;  %666 = vst.msk [vmem:[%s1225_s10 + $0xc8] sm:$0xff] %vm652_vm0, %v649_v4 }
 0x114   : > { %v579_v43 = vpop.permute.xlu1 %578 }
 0x115   : > { %v609_v7 = vmul.f32 %v1201_v56, %v579_v43  ;;  %v646_v39 = vadd.f32 %v1213_v40, %v623_v52  ;;  %v651_v9 = vadd.f32 %v1213_v40, %v628_v25 }
 0x117   : > { %v625_v11 = vadd.f32 %v609_v7, %v525_v8  ;;  %663 = vst.msk [vmem:[%s1225_s10 + $0xa0] sm:$0xff] %vm652_vm0, %v646_v39  ;;  %705 = vrot.lane.b32.xlu1 %v646_v39, %s974_s11  ;;  %707 = vrot.lane.b32.xlu0 %v647_v44, %s974_s11  ;;  %668 = vst.msk [vmem:[%s1225_s10 + $0xe8] sm:$0xff] %vm652_vm0, %v651_v9 }
 0x118   : > { %v587_v13 = vpop.permute.xlu1 %586 }
 0x119   : > { %v611_v51 = vmul.f32 %v1201_v56, %v587_v13  ;;  %v648_v5 = vadd.f32 %v1213_v40, %v625_v11 }
 0x11b   : > { %v627_v31 = vadd.f32 %v611_v51, %v527_v45  ;;  %665 = vst.msk [vmem:[%s1225_s10 + $0xc0] sm:$0xff] %vm652_vm0, %v648_v5  ;;  %709 = vrot.lane.b32.xlu1 %v648_v5, %s974_s11  ;;  %711 = vrot.lane.b32.xlu0 %v649_v4, %s974_s11 }
 0x11d   : > { %v650_v12 = vadd.f32 %v1213_v40, %v627_v31 }
 0x11f   : > { %667 = vst.msk [vmem:[%s1225_s10 + $0xe0] sm:$0xff] %vm652_vm0, %v650_v12  ;;  %713 = vrot.lane.b32.xlu1 %v650_v12, %s974_s11  ;;  %715 = vrot.lane.b32.xlu0 %v651_v9, %s974_s11 }
 0x16d   : > { %v686_v18 = vpop.permute.xlu1 %685 }
 0x16e   : > { %859 = vst.msk [vmem:[%s1225_s10 + $0x10] sm:$0xff] %vm652_vm0, %v686_v18 }
 0x175   : > { %v688_v56 = vpop.permute.xlu0 %687 }
 0x176   : > { %860 = vst.msk [vmem:[%s1225_s10 + $0x18] sm:$0xff] %vm652_vm0, %v688_v56 }
 0x179   : > { %v690_v54 = vpop.permute.xlu1 %689  ;;  %v692_v14 = vpop.permute.xlu0 %691 }
 0x17a   : > { %861 = vst.msk [vmem:[%s1225_s10 + $0x30] sm:$0xff] %vm652_vm0, %v690_v54  ;;  %862 = vst.msk [vmem:[%s1225_s10 + $0x38] sm:$0xff] %vm652_vm0, %v692_v14 }
 0x17d   : > { %v694_v40 = vpop.permute.xlu1 %693  ;;  %v696_v24 = vpop.permute.xlu0 %695 }
 0x17e   : > { %863 = vst.msk [vmem:[%s1225_s10 + $0x50] sm:$0xff] %vm652_vm0, %v694_v40  ;;  %864 = vst.msk [vmem:[%s1225_s10 + $0x58] sm:$0xff] %vm652_vm0, %v696_v24 }
 0x181   : > { %v698_v16 = vpop.permute.xlu1 %697  ;;  %v700_v17 = vpop.permute.xlu0 %699 }
 0x182   : > { %865 = vst.msk [vmem:[%s1225_s10 + $0x70] sm:$0xff] %vm652_vm0, %v698_v16  ;;  %866 = vst.msk [vmem:[%s1225_s10 + $0x78] sm:$0xff] %vm652_vm0, %v700_v17 }
 0x185   : > { %v702_v57 = vpop.permute.xlu1 %701  ;;  %v704_v29 = vpop.permute.xlu0 %703 }
 0x186   : > { %867 = vst.msk [vmem:[%s1225_s10 + $0x90] sm:$0xff] %vm652_vm0, %v702_v57  ;;  %868 = vst.msk [vmem:[%s1225_s10 + $0x98] sm:$0xff] %vm652_vm0, %v704_v29 }
 0x189   : > { %v706_v19 = vpop.permute.xlu1 %705  ;;  %v708_v20 = vpop.permute.xlu0 %707 }
 0x18a   : > { %869 = vst.msk [vmem:[%s1225_s10 + $0xb0] sm:$0xff] %vm652_vm0, %v706_v19  ;;  %870 = vst.msk [vmem:[%s1225_s10 + $0xb8] sm:$0xff] %vm652_vm0, %v708_v20 }
 0x18d   : > { %v710_v50 = vpop.permute.xlu1 %709  ;;  %v712_v27 = vpop.permute.xlu0 %711 }
 0x18e   : > { %871 = vst.msk [vmem:[%s1225_s10 + $0xd0] sm:$0xff] %vm652_vm0, %v710_v50  ;;  %872 = vst.msk [vmem:[%s1225_s10 + $0xd8] sm:$0xff] %vm652_vm0, %v712_v27 }
 0x191   : > { %v714_v10 = vpop.permute.xlu1 %713  ;;  %v716_v34 = vpop.permute.xlu0 %715 }
 0x192   : > { %873 = vst.msk [vmem:[%s1225_s10 + $0xf0] sm:$0xff] %vm652_vm0, %v714_v10  ;;  %874 = vst.msk [vmem:[%s1225_s10 + $0xf8] sm:$0xff] %vm652_vm0, %v716_v34 }
 0x193 PF: > { %s13_s16 = sadd.s32 1, %s968_s16   ;;  %s1407_s12 = smov %s960_s14 }
 0x194   : > { %p10_p8 = scmp.ge.s32.totalorder %s13_s16, 6   ;;  %s1408_s13 = smov %s964_s15 }
 0x195   : > { %s1409_s14 = smov %s1412_s17  ;;  %s1410_s15 = smov %s1416_s18 }
 0x196   :  { %12 = sbr.rel (!%p10_p8) target bundleno = 3 (0x3), region = 63 }

</bundles_post_ra>
